<compile_context>
chip_gen: v7x
topology: tpu7x:2x2x1
jax: 0.10.0
libtpu: 0.0.40
codegen_flags: <defaults>
</compile_context>

<pallas_src>
import jax
import jax.numpy as jnp
from jax.experimental import pallas as pl
from jax.experimental.pallas import tpu as pltpu

EPS = 1e-12


def _round_up(x: int, m: int) -> int:
    return (x + m - 1) // m * m


def _sublane_multiple(dtype) -> int:
    # f32 -> 8 rows per vreg sublane group, bf16 -> 16, int8/fp8 -> 32.
    itemsize = jnp.dtype(dtype).itemsize
    return max(8, 32 // itemsize)


def _l2_normalize_kernel(x_ref, o_ref):
    # Upcast so the sq-sum accumulates in f32 even for bf16/fp8 inputs.
    x = x_ref[...].astype(jnp.float32)
    sq_sum = jnp.sum(x * x, axis=-1, keepdims=True)
    # 1 / max(sqrt(sq_sum), EPS) == rsqrt(max(sq_sum, EPS^2)); rsqrt runs on the
    # EUP and the per-element divide becomes a cheap vmul.
    inv = jax.lax.rsqrt(jnp.maximum(sq_sum, EPS * EPS))
    o_ref[...] = (x * inv).astype(o_ref.dtype)


def l2_normalize(x, *, tile_b=None, vmem_budget_bytes=12 * 1024 * 1024):
    """F.normalize(x, p=2, dim=1) for a 2-D input (B, D)."""
    B, D = x.shape
    orig_dtype = x.dtype
    itemsize = jnp.dtype(orig_dtype).itemsize
    sub = _sublane_multiple(orig_dtype)

    # Lane-dense feature dim: pad D to a multiple of 128 (zeros do not change
    # the L2 norm), so stores are full-lane vst instead of masked partials.
    D_pad = _round_up(D, 128)
    if D_pad != D:
        x = jnp.pad(x, ((0, 0), (0, D_pad - D)))

    if tile_b is None:
        # 2 arrays (in + out) x 2 pipeline buffers each -> 4 tiles live in VMEM.
        bytes_per_row = 4 * D_pad * itemsize
        tile_b = max(sub, min(1024, vmem_budget_bytes // bytes_per_row))
    # Never exceed the (padded) batch, keep a sublane-aligned row count.
    tile_b = _round_up(min(int(tile_b), _round_up(B, sub)), sub)

    # Pad the batch instead of asserting divisibility; padded rows are zero and
    # are sliced away afterwards.
    B_pad = _round_up(B, tile_b)
    if B_pad != B:
        x = jnp.pad(x, ((0, B_pad - B), (0, 0)))

    grid = (B_pad // tile_b,)
    out = pl.pallas_call(
        _l2_normalize_kernel,
        out_shape=jax.ShapeDtypeStruct((B_pad, D_pad), orig_dtype),
        grid=grid,
        in_specs=[pl.BlockSpec((tile_b, D_pad), lambda i: (i, 0))],
        out_specs=pl.BlockSpec((tile_b, D_pad), lambda i: (i, 0)),
        compiler_params=pltpu.CompilerParams(
            dimension_semantics=("parallel",),   # megacore split on v7x
            vmem_limit_bytes=32 * 1024 * 1024,   # >= v5e's 16 MiB default, == v6e/v7x default
        ),
    )(x)
    return out[:B, :D]


if __name__ == "__main__":
    key = jax.random.PRNGKey(0)
    # Small embedding-like shape: batch=6, embedding dim=300 (exercises both
    # the lane padding 300->384 and the batch padding 6->8).
    B, D = 6, 300
    x = jax.random.normal(key, (B, D), dtype=jnp.float32)

    out = l2_normalize(x)
    out = jax.block_until_ready(out)

    # Reference check against plain JAX (same semantics as F.normalize).
    ref_norm = jnp.sqrt(jnp.sum(x * x, axis=1, keepdims=True))
    ref = x / jnp.maximum(ref_norm, EPS)
    assert out.shape == (B, D), "shape mismatch"
    assert jnp.allclose(out, ref, atol=2e-6, rtol=2e-6), "mismatch vs reference"

    print("KERNEL_OK")
</pallas_src>

<mosaic_0001>
module attributes {stable_mosaic.version = 11 : i64} {
  func.func @_l2_normalize_kernel(%arg0: i32, %arg1: memref<8x384xf32, #tpu.memory_space<vmem>>, %arg2: memref<8x384xf32, #tpu.memory_space<vmem>>) attributes {dimension_semantics = [#tpu.dimension_semantics<parallel>], iteration_bounds = array<i64: 1>, scalar_prefetch = 0 : i64, scratch_operands = 0 : i64, tpu.core_type = #tpu.core_type<tc>, window_params = [{transform_indices = @transform_0, window_bounds = array<i64: 8, 384>}, {transform_indices = @transform_1, window_bounds = array<i64: 8, 384>}]} {
    %c0 = arith.constant 0 : index
    %c0_0 = arith.constant 0 : index
    %0 = vector.load %arg1[%c0, %c0_0] : memref<8x384xf32, #tpu.memory_space<vmem>>, vector<8x384xf32>
    %1 = arith.mulf %0, %0 : vector<8x384xf32>
    %cst = arith.constant dense<0.000000e+00> : vector<8xf32>
    %2 = vector.multi_reduction <add>, %1, %cst [1] : vector<8x384xf32> to vector<8xf32>
    %3 = vector.shape_cast %2 : vector<8xf32> to vector<8x1xf32>
    %cst_1 = arith.constant 1.000000e-24 : f32
    %4 = vector.broadcast %cst_1 : f32 to vector<8x1xf32>
    %5 = arith.maximumf %3, %4 : vector<8x1xf32>
    %6 = math.rsqrt %5 : vector<8x1xf32>
    %7 = vector.broadcast %6 : vector<8x1xf32> to vector<8x384xf32>
    %8 = arith.mulf %0, %7 : vector<8x384xf32>
    %c0_2 = arith.constant 0 : index
    %c0_3 = arith.constant 0 : index
    %9 = vector.load %arg2[%c0_2, %c0_3] : memref<8x384xf32, #tpu.memory_space<vmem>>, vector<8x384xf32>
    tpu.vector_store %arg2[%c0_2, %c0_3], %8 {strides = array<i32>} : memref<8x384xf32, #tpu.memory_space<vmem>>, vector<8x384xf32>,
    return
  }
  func.func @transform_0(%arg0: i32) -> (i32, i32) {
    %c0_i32 = arith.constant 0 : i32
    %c0_i32_0 = arith.constant 0 : i32
    return %arg0, %c0_i32 : i32, i32
  }
  func.func @transform_1(%arg0: i32) -> (i32, i32) {
    %c0_i32 = arith.constant 0 : i32
    %c0_i32_0 = arith.constant 0 : i32
    return %arg0, %c0_i32 : i32, i32
  }
}

</mosaic_0001>

<bundles_post_ra>
// kernel: tpu_custom_call.1
= control target key start
LH: loop header
LB: loop body
LE: loop exit
PB: predicated region body
PF: predicated region fallthrough
CT: control target
= control target key end

     0   :  { %6 = vsyncpa [#allocation3], 0  ;;  %s142_s0 = inlined_call_operand.hbm [shape: f32[8,384], index: 0, kind: input, shape index: {}]   ;;  %s143_s1 = inlined_call_operand.hbm [shape: f32[8,384], index: 1, kind: output, shape index: {}]  }
   0x1   :  { %7 = vsyncpa [#allocation4], 0  ;;  %s106_s6 = smov [#allocation2]   ;;  %s58_s10 = scalar_lea.hbm %s142_s0, 384 }
   0x2   :  { %s14_s7 = sshll.u32 %s106_s6, 4  ;;  %p59_p0 = scmp.ne.s32.totalorder %s142_s0, %s58_s10  ;;  %s15_s7 = int_to_ptr.vmem [resolvable:$true] %s14_s7 }
   0x3   :  { %p62_p1 = scmp.lt.u32.totalorder %s58_s10, %s142_s0 }
   0x5   :  { %p64_p2 = pnand %p62_p1, %p59_p0 }
   0x7   :  { %67 = shalt.err (!%p64_p2)
}
   0x8   :  { %s68_s15 = scalar_lea.vmem %s15_s7, 384  ;;  %p73_p4 = scmp.lt.s32.totalorder %s15_s7, %s15_s7 }
   0x9   :  { %p69_p3 = scmp.ne.s32.totalorder %s15_s7, %s68_s15  ;;  %p74_p5 = scmp.lt.s32.totalorder %s68_s15, %s68_s15 }
   0xb   :  { %p75_p6 = por %p74_p5, %p73_p4 }
   0xd   :  { %p76_p7 = pnand %p75_p6, %p69_p3 }
   0xf   :  { %79 = shalt.err (!%p76_p7)
}
  0x10   :  { %17 = dma.hbm_to_vmem [thread:$0]  %s142_s0, 384, %s15_s7, [#allocation3]  }
  0x11   :  { %102 = dma.done.wait [#allocation3], 384  }
  0x12   :  { %103 = vsyncadd [#allocation3], 4294966912  ;;  %v21_v0 = vld [vmem:[#allocation2] sm:$0xff]  ;;  %v22_v1 = vld [vmem:[#allocation2 + $0x8] sm:$0xff]  ;;  %s107_s18 = smov [#allocation5]  }
  0x13   :  { %v23_v2 = vld [vmem:[#allocation2 + $0x10] sm:$0xff]  ;;  %v24_v3 = vmul.f32 %v21_v0, %v21_v0  ;;  %v25_v4 = vmul.f32 %v22_v1, %v22_v1  ;;  %s45_s19 = sshll.u32 %s107_s18, 4  ;;  %s46_s19 = int_to_ptr.vmem [resolvable:$true] %s45_s19 }
  0x14   :  { %v26_v5 = vmul.f32 %v23_v2, %v23_v2  ;;  %s80_s0 = scalar_lea.vmem %s46_s19, 384  ;;  %p85_p9 = scmp.lt.s32.totalorder %s46_s19, %s46_s19 }
  0x15   :  { %v27_v6 = vadd.f32 %v25_v4, %v24_v3  ;;  %p81_p8 = scmp.ne.s32.totalorder %s46_s19, %s80_s0  ;;  %p86_p10 = scmp.lt.s32.totalorder %s80_s0, %s80_s0 }
  0x17   :  { %v28_v7 = vadd.f32 %v27_v6, %v26_v5  ;;  %p87_p11 = por %p86_p10, %p85_p9 }
  0x19   :  { %29 = vadd.xlane.f32.xlu0 %v28_v7  ;;  %p88_p12 = pnand %p87_p11, %p81_p8 }
  0xa6   :  { %v30_v8 = vpop.xlane.xlu0 %29 }
  0xa7   :  { %v31_v9 = vmax.f32 %v30_v8, 1e-24 }
  0xa9   :  { %56 = vrsqrt.f32 %v31_v9 }
  0xb3   :  { %v57_v10 = vpop.eup %56 }
  0xb4   :  { %v33_v11 = vmul.f32 %v57_v10, %v21_v0  ;;  %v34_v12 = vmul.f32 %v57_v10, %v22_v1  ;;  %v35_v13 = vmul.f32 %v57_v10, %v23_v2 }
  0xb6   :  { %36 = vst [vmem:[#allocation5] sm:$0xff] %v33_v11  ;;  %37 = vst [vmem:[#allocation5 + $0x8] sm:$0xff] %v34_v12 }
  0xb7   :  { %38 = vst [vmem:[#allocation5 + $0x10] sm:$0xff] %v35_v13 }
  0xb8   :  { %91 = shalt.err (!%p88_p12)
}
  0xb9   :  { %s92_s22 = scalar_lea.hbm %s143_s1, 384 }
  0xba   :  { %p93_p13 = scmp.ne.s32.totalorder %s143_s1, %s92_s22  ;;  %p96_p0 = scmp.lt.u32.totalorder %s92_s22, %s143_s1 }
  0xbc   :  { %p98_p1 = pnand %p96_p0, %p93_p13 }
  0xbe   :  { %101 = shalt.err (!%p98_p1)
}
  0xbf   :  { %48 = dma.vmem_to_hbm [thread:$0]  %s46_s19, 384, %s143_s1, [#allocation4]  }
  0xc0   :  { %104 = dma.done.wait [#allocation4], 384  }
  0xc1   :  { %105 = vsyncadd [#allocation4], 4294966912 }
  0xc2   :  { %52 = vsyncpa [#allocation3], 1 }
  0xc3   :  { %53 = vsyncpa [#allocation4], 1 }

</bundles_post_ra>
